<compile_context>
chip_gen: v7x
topology: tpu7x:2x2x1
jax: 0.10.0
libtpu: 0.0.40
codegen_flags: <defaults>
</compile_context>

<pallas_src>
import math

import jax
import jax.numpy as jnp
import numpy as np
from jax.experimental import pallas as pl
from jax.experimental.pallas import tpu as pltpu

LOG_2PI = math.log(2.0 * math.pi)


def _round_up(x, m):
    return ((x + m - 1) // m) * m


# --------------------------- hardware queries ------------------------------ #
def _vmem_capacity_bytes():
    """Physical VMEM per TensorCore; conservative fallback is v7x (64 MiB)."""
    try:
        info = pltpu.get_tpu_info()
        cap = int(getattr(info, "vmem_capacity_bytes", 0))
        if cap > 0:
            return cap
    except Exception:
        pass
    return 64 * 1024 * 1024


def _preferred_lane_width():
    """MXU-matched lane tile: 256 on v6e/v7x, 128 on v4/v5e/v5p."""
    kind = ""
    try:
        kind = jax.devices()[0].device_kind.lower()
    except Exception:
        pass
    if "v6" in kind or "v7" in kind:
        return 256
    return 128


# ------------------------------ tiling plan -------------------------------- #
def _plan(M, D_pad, force_tiled=False):
    vmem_cap = _vmem_capacity_bytes()
    lane = _preferred_lane_width()
    tm_cap = 256 if lane == 256 else 128

    # --- M tile: prefer exact divisor of M (no pad/slice) and >=2 i tiles
    #     so the "parallel" axis load-balances across v7x's two TensorCores.
    candidates = [c for c in (tm_cap, 128, 64, 32, 16) if c <= tm_cap]
    tm = None
    for cand in candidates:
        if M % cand == 0 and M // cand >= 2:
            tm = cand
            break
    if tm is None:
        for cand in candidates:
            if cand <= M and M % cand == 0:
                tm = cand
                break
    if tm is None:
        tm = min(tm_cap, max(16, _round_up(M, 16)))   # bf16: >=16 rows per tile
    M_pad = _round_up(M, tm)

    # --- fast path budget: W fully VMEM-resident, single grid axis.
    #     Conservative: assume everything double-buffered + f32 dot headroom.
    def fast_bytes(tm_):
        return (2 * D_pad * D_pad * 2       # W (bf16)
                + 2 * tm_ * D_pad * 2       # patch tile (bf16)
                + 2 * D_pad * 4             # bias (f32)
                + 2 * tm_ * D_pad * 2       # z out tile (bf16)
                + 2 * tm_ * 4               # lpsq out tile (f32)
                + tm_ * D_pad * 4)          # f32 dot result headroom

    budget = int(0.6 * vmem_cap)
    use_fast = (not force_tiled) and fast_bytes(tm) <= budget

    if use_fast:
        tn = tk = D_pad
        need = fast_bytes(tm)
    else:
        tn = lane if D_pad % lane == 0 else 128
        tk = 128
        for cand in (1024, 512, 256):       # large tk amortizes acc RMW / step overhead
            if D_pad % cand == 0:
                tk = cand
                break
        need = (2 * tm * tk * 2 + 2 * tk * tn * 2 + 2 * tn * 4
                + 2 * tm * tn * 2 + 2 * tm * 4 + tm * tn * 4)

    vmem_limit = int(min(0.9 * vmem_cap, max(need + (16 << 20), 32 << 20)))
    return tm, tn, tk, M_pad, use_fast, vmem_limit


# ----------------------------- Pallas kernels ------------------------------ #
def _patch_glow_fast_kernel(p_ref, w_ref, b_ref, z_ref, lpsq_ref):
    # p_ref   : (tm, D_pad)    bf16 patch rows, flattened (c, kh, kw) like F.unfold
    # w_ref   : (D_pad, D_pad) bf16 weight, resident in VMEM (constant block)
    # b_ref   : (1, D_pad)     f32 bias
    # z_ref   : (tm, D_pad)    bf16 output tile (single lane-dense store)
    # lpsq_ref: (tm, 1)        f32 per-row sum_d z^2
    z = jnp.dot(p_ref[...], w_ref[...], preferred_element_type=jnp.float32)
    z = z + b_ref[...]
    z_ref[...] = z.astype(z_ref.dtype)
    lpsq_ref[...] = jnp.sum(z * z, axis=-1, keepdims=True)


def _patch_glow_tiled_kernel(p_ref, w_ref, b_ref, z_ref, lpsq_ref, acc_ref):
    # K-tiled fallback (large D): f32 VMEM scratch accumulator, bf16 z output.
    # p_ref   : (tm, tk) bf16, w_ref: (tk, tn) bf16, b_ref: (1, tn) f32
    # z_ref   : (tm, tn) bf16 output, written only on the last k step
    # lpsq_ref: (tm, 1)  f32, accumulated over (j, k), resident across them
    # acc_ref : (tm, tn) f32 VMEM scratch accumulator
    j = pl.program_id(1)
    k = pl.program_id(2)
    nk = pl.num_programs(2)

    @pl.when(k == 0)
    def _():
        acc_ref[...] = jnp.zeros_like(acc_ref)

    @pl.when((j == 0) & (k == 0))
    def _():
        lpsq_ref[...] = jnp.zeros_like(lpsq_ref)

    acc_ref[...] += jnp.dot(p_ref[...], w_ref[...],
                            preferred_element_type=jnp.float32)

    @pl.when(k == nk - 1)
    def _():
        z = acc_ref[...] + b_ref[...]
        z_ref[...] = z.astype(z_ref.dtype)
        lpsq_ref[...] += jnp.sum(z * z, axis=-1, keepdims=True)


# ------------------------------ glue (JAX) --------------------------------- #
def unfold_patches_batch(x, size):
    """Same semantics as the torch helper: (N,C,H,W) -> (N*L, C, p, p)."""
    N, C, H, W = x.shape
    assert H % size == 0 and W % size == 0, "H, W must be multiples of patch_size"
    gh, gw = H // size, W // size
    xr = x.reshape(N, C, gh, size, gw, size)
    patches = xr.transpose(0, 2, 4, 1, 3, 5)            # (N, gh, gw, C, p, p)
    return patches.reshape(N * gh * gw, C, size, size)  # row = n*L + l (w fastest)


def prepare_params(W, b):
    """Cast + lane-pad parameters ONCE, outside the per-call path."""
    D = W.shape[0]
    D_pad = _round_up(D, 128)
    W_bf = W.astype(jnp.bfloat16)
    b_f32 = jnp.asarray(b, dtype=jnp.float32).reshape(1, D)
    if D_pad > D:
        W_bf = jnp.pad(W_bf, ((0, D_pad - D), (0, D_pad - D)))
        b_f32 = jnp.pad(b_f32, ((0, 0), (0, D_pad - D)))
    return W_bf, b_f32


def wrap_for_patches_forward(x, W_bf, b_f32, patch_size, force_tiled=False):
    """Returns (out, image_lp) with out: (N*L, C, p, p) bf16, image_lp: (N,) f32."""
    N, C, H, Wd = x.shape
    p = patch_size
    L = (H // p) * (Wd // p)
    D = C * p * p
    M = N * L
    D_pad = W_bf.shape[1]

    patches = unfold_patches_batch(x, p)                 # (M, C, p, p)
    pflat = patches.reshape(M, D).astype(jnp.bfloat16)   # bf16 -> MXU, half HBM

    tm, tn, tk, M_pad, use_fast, vmem_limit = _plan(M, D_pad, force_tiled)

    if M_pad > M or D_pad > D:
        pflat = jnp.pad(pflat, ((0, M_pad - M), (0, D_pad - D)))

    out_shapes = (
        jax.ShapeDtypeStruct((M_pad, D_pad), jnp.bfloat16),   # z (bf16 store)
        jax.ShapeDtypeStruct((M_pad, 1), jnp.float32),        # sum_d z^2
    )
    flops = 2 * M_pad * D_pad * D_pad

    if use_fast:
        ni = M_pad // tm
        bytes_accessed = (M_pad * D_pad * 2          # patches, read once
                          + D_pad * D_pad * 2        # W, read once (resident)
                          + D_pad * 4                # bias
                          + M_pad * D_pad * 2        # z out (bf16)
                          + M_pad * 4)               # lpsq out
        z_pad, lpsq = pl.pallas_call(
            _patch_glow_fast_kernel,
            out_shape=out_shapes,
            grid_spec=pltpu.PrefetchScalarGridSpec(
                num_scalar_prefetch=0,
                grid=(ni,),
                in_specs=[
                    pl.BlockSpec((tm, D_pad), lambda i: (i, 0)),       # patches
                    pl.BlockSpec((D_pad, D_pad), lambda i: (0, 0)),    # W resident
                    pl.BlockSpec((1, D_pad), lambda i: (0, 0)),        # bias
                ],
                out_specs=(
                    pl.BlockSpec((tm, D_pad), lambda i: (i, 0)),       # z
                    pl.BlockSpec((tm, 1), lambda i: (i, 0)),           # sum(z^2)
                ),
            ),
            compiler_params=pltpu.CompilerParams(
                dimension_semantics=("parallel",),
                vmem_limit_bytes=vmem_limit,
            ),
            cost_estimate=pl.CostEstimate(
                flops=flops, transcendentals=0, bytes_accessed=bytes_accessed),
        )(pflat, W_bf, b_f32)
    else:
        ni, nj, nk = M_pad // tm, D_pad // tn, D_pad // tk
        bytes_accessed = (M_pad * D_pad * 2 * nj     # patch slab re-read per j
                          + ni * D_pad * D_pad * 2   # W re-read per i
                          + ni * nj * tn * 4         # bias
                          + M_pad * D_pad * 2        # z out (bf16)
                          + M_pad * 4)               # lpsq out
        z_pad, lpsq = pl.pallas_call(
            _patch_glow_tiled_kernel,
            out_shape=out_shapes,
            grid_spec=pltpu.PrefetchScalarGridSpec(
                num_scalar_prefetch=0,
                grid=(ni, nj, nk),
                in_specs=[
                    pl.BlockSpec((tm, tk), lambda i, j, k: (i, k)),    # patches
                    pl.BlockSpec((tk, tn), lambda i, j, k: (k, j)),    # W tile
                    pl.BlockSpec((1, tn), lambda i, j, k: (0, j)),     # bias tile
                ],
                out_specs=(
                    pl.BlockSpec((tm, tn), lambda i, j, k: (i, j)),    # z
                    pl.BlockSpec((tm, 1), lambda i, j, k: (i, 0)),     # sum(z^2)
                ),
                scratch_shapes=[pltpu.VMEM((tm, tn), jnp.float32)],    # f32 acc
            ),
            compiler_params=pltpu.CompilerParams(
                dimension_semantics=("parallel", "arbitrary", "arbitrary"),
                vmem_limit_bytes=vmem_limit,
            ),
            cost_estimate=pl.CostEstimate(
                flops=flops, transcendentals=0, bytes_accessed=bytes_accessed),
        )(pflat, W_bf, b_f32)

    # cheap epilogue: strip padding (no-op when tm divides M and D % 128 == 0),
    # per-patch lp, per-image sum over L rows.
    z = z_pad if (M_pad == M and D_pad == D) else z_pad[:M, :D]
    out = z.reshape(M, C, p, p)
    lp_row = -0.5 * lpsq[:M, 0] - 0.5 * D * LOG_2PI
    image_lp = jnp.sum(lp_row.reshape(N, L), axis=1)
    return out, image_lp


# TODO(synk): `invert` raises ValueError in the reference module; not implemented.


# ------------------------------- main -------------------------------------- #
if __name__ == "__main__":
    key = jax.random.PRNGKey(0)
    kx, kw, kb = jax.random.split(key, 3)

    N, C, H, Wd = 2, 4, 16, 16
    patch_size = 8
    D = C * patch_size * patch_size
    L = (H // patch_size) * (Wd // patch_size)

    x = jax.random.normal(kx, (N, C, H, Wd), dtype=jnp.float32)
    # deterministic synthetic "model" parameters
    W = (0.9 * jnp.eye(D, dtype=jnp.float32)
         + 0.02 * jax.random.normal(kw, (D, D), dtype=jnp.float32))
    b = 0.05 * jax.random.normal(kb, (1, D), dtype=jnp.float32)

    # Parameters are static: cast/pad once, outside the jitted per-call path.
    W_bf, b_f32 = prepare_params(W, b)
    W_bf, b_f32 = jax.block_until_ready((W_bf, b_f32))

    fwd = jax.jit(wrap_for_patches_forward, static_argnums=(3, 4))
    out, image_lp = fwd(x, W_bf, b_f32, patch_size, False)   # W-resident fast path
    jax.block_until_ready((out, image_lp))

    # pure-JAX f32 reference for correctness check
    pflat_ref = unfold_patches_batch(x, patch_size).reshape(N, L, D)
    z_ref = pflat_ref @ W + b
    lp_patch_ref = -0.5 * jnp.sum(z_ref * z_ref, axis=-1) - 0.5 * D * LOG_2PI
    image_lp_ref = jnp.sum(lp_patch_ref, axis=1)
    out_ref = z_ref.reshape(N * L, C, patch_size, patch_size)

    # bf16 MXU operands + bf16 z store -> loosened tolerances vs the f32 reference
    np.testing.assert_allclose(np.asarray(out.astype(jnp.float32)),
                               np.asarray(out_ref), rtol=5e-2, atol=1e-1)
    np.testing.assert_allclose(np.asarray(image_lp), np.asarray(image_lp_ref),
                               rtol=1e-2, atol=2.0)

    # Also exercise the K-tiled fallback path (used when W exceeds the VMEM budget).
    out_t, image_lp_t = fwd(x, W_bf, b_f32, patch_size, True)
    jax.block_until_ready((out_t, image_lp_t))
    np.testing.assert_allclose(np.asarray(out_t.astype(jnp.float32)),
                               np.asarray(out_ref), rtol=5e-2, atol=1e-1)
    np.testing.assert_allclose(np.asarray(image_lp_t), np.asarray(image_lp_ref),
                               rtol=1e-2, atol=2.0)

    print("KERNEL_OK")
</pallas_src>

<mosaic_0001>
module attributes {stable_mosaic.version = 11 : i64} {
  func.func @_patch_glow_fast_kernel(%arg0: i32, %arg1: memref<16x256xbf16, #tpu.memory_space<vmem>>, %arg2: memref<256x256xbf16, #tpu.memory_space<vmem>>, %arg3: memref<1x256xf32, #tpu.memory_space<vmem>>, %arg4: memref<16x256xbf16, #tpu.memory_space<vmem>>, %arg5: memref<16x1xf32, #tpu.memory_space<vmem>>) attributes {dimension_semantics = [#tpu.dimension_semantics<parallel>], iteration_bounds = array<i64: 1>, scalar_prefetch = 0 : i64, scratch_operands = 0 : i64, tpu.core_type = #tpu.core_type<tc>, window_params = [{transform_indices = @transform_0, window_bounds = array<i64: 16, 256>}, {pipeline_mode = #tpu.pipeline_mode<synchronous>, transform_indices = @transform_1, window_bounds = array<i64: 256, 256>}, {pipeline_mode = #tpu.pipeline_mode<synchronous>, transform_indices = @transform_2, window_bounds = array<i64: 1, 256>}, {transform_indices = @transform_3, window_bounds = array<i64: 16, 256>}, {transform_indices = @transform_4, window_bounds = array<i64: 16, 1>}]} {
    %c0 = arith.constant 0 : index
    %c0_0 = arith.constant 0 : index
    %0 = vector.load %arg1[%c0, %c0_0] : memref<16x256xbf16, #tpu.memory_space<vmem>>, vector<16x256xbf16>
    %c0_1 = arith.constant 0 : index
    %c0_2 = arith.constant 0 : index
    %1 = vector.load %arg2[%c0_1, %c0_2] : memref<256x256xbf16, #tpu.memory_space<vmem>>, vector<256x256xbf16>
    %cst = arith.constant dense<0.000000e+00> : vector<16x256xf32>
    %2 = tpu.matmul %0, %1, %cst {dimension_numbers = #tpu.dot_dimension_numbers<[1], [0], [0], [1], [0, 0, 1, 1], [], []>} : vector<16x256xbf16>, vector<256x256xbf16>, vector<16x256xf32> -> vector<16x256xf32>
    %c0_3 = arith.constant 0 : index
    %c0_4 = arith.constant 0 : index
    %3 = vector.load %arg3[%c0_3, %c0_4] : memref<1x256xf32, #tpu.memory_space<vmem>>, vector<1x256xf32>
    %4 = vector.broadcast %3 : vector<1x256xf32> to vector<16x256xf32>
    %5 = arith.addf %2, %4 : vector<16x256xf32>
    %6 = arith.truncf %5 : vector<16x256xf32> to vector<16x256xbf16>
    %c0_5 = arith.constant 0 : index
    %c0_6 = arith.constant 0 : index
    %7 = vector.load %arg4[%c0_5, %c0_6] : memref<16x256xbf16, #tpu.memory_space<vmem>>, vector<16x256xbf16>
    tpu.vector_store %arg4[%c0_5, %c0_6], %6 {strides = array<i32>} : memref<16x256xbf16, #tpu.memory_space<vmem>>, vector<16x256xbf16>,
    %8 = arith.mulf %5, %5 : vector<16x256xf32>
    %cst_7 = arith.constant dense<0.000000e+00> : vector<16xf32>
    %9 = vector.multi_reduction <add>, %8, %cst_7 [1] : vector<16x256xf32> to vector<16xf32>
    %10 = vector.shape_cast %9 : vector<16xf32> to vector<16x1xf32>
    %c0_8 = arith.constant 0 : index
    %c0_9 = arith.constant 0 : index
    %11 = vector.load %arg5[%c0_8, %c0_9] : memref<16x1xf32, #tpu.memory_space<vmem>>, vector<16x1xf32>
    tpu.vector_store %arg5[%c0_8, %c0_9], %10 {strides = array<i32>} : memref<16x1xf32, #tpu.memory_space<vmem>>, vector<16x1xf32>,
    return
  }
  func.func @transform_0(%arg0: i32) -> (i32, i32) {
    %c0_i32 = arith.constant 0 : i32
    %c0_i32_0 = arith.constant 0 : i32
    return %arg0, %c0_i32 : i32, i32
  }
  func.func @transform_1(%arg0: i32) -> (i32, i32) {
    %c0_i32 = arith.constant 0 : i32
    %c0_i32_0 = arith.constant 0 : i32
    %c0_i32_1 = arith.constant 0 : i32
    return %c0_i32, %c0_i32_0 : i32, i32
  }
  func.func @transform_2(%arg0: i32) -> (i32, i32) {
    %c0_i32 = arith.constant 0 : i32
    %c0_i32_0 = arith.constant 0 : i32
    %c0_i32_1 = arith.constant 0 : i32
    return %c0_i32, %c0_i32_0 : i32, i32
  }
  func.func @transform_3(%arg0: i32) -> (i32, i32) {
    %c0_i32 = arith.constant 0 : i32
    %c0_i32_0 = arith.constant 0 : i32
    return %arg0, %c0_i32 : i32, i32
  }
  func.func @transform_4(%arg0: i32) -> (i32, i32) {
    %c0_i32 = arith.constant 0 : i32
    %c0_i32_0 = arith.constant 0 : i32
    return %arg0, %c0_i32 : i32, i32
  }
}

</mosaic_0001>

<bundles_post_ra>
// kernel: wrap_for_patches_forward.1
= control target key start
LH: loop header
LB: loop body
LE: loop exit
PB: predicated region body
PF: predicated region fallthrough
CT: control target
= control target key end

     0   :  { %v52_v34 = vlaneseq  ;;  %vm299_vm0 = vcmask 7168   ;;  %s541_s1 = inlined_call_operand.vmem [shape: bf16[256,256], index: 1, kind: input, shape index: {}]   ;;  %s542_s0 = inlined_call_operand.vmem [shape: bf16[16,256], index: 0, kind: input, shape index: {}]   ;;  %s543_s2 = inlined_call_operand.vmem [shape: f32[1,256], index: 2, kind: input, shape index: {}]   ;;  %s544_s3 = inlined_call_operand.vmem [shape: bf16[16,256], index: 3, kind: output, shape index: {0}]   ;;  %s545_s4 = inlined_call_operand.vmem [shape: f32[16,1], index: 4, kind: output, shape index: {1}]  }
   0x1   :  { %v348_v0 = vld [vmem:[%s541_s1 + $0x4] ss:$8 sps:$4 sm:$0xff]   ;;  %v350_v1 = vld [vmem:[%s541_s1] ss:$8 sps:$4 sm:$0xff]   ;;  %v351_v2 = vld [vmem:[%s541_s1 + $0x14] ss:$8 sps:$4 sm:$0xff]  }
   0x2   :  { %232 = vmatprep.subr.bf16.mxu0 %v348_v0  ;;  %v353_v3 = vld [vmem:[%s541_s1 + $0x10] ss:$8 sps:$4 sm:$0xff]   ;;  %v354_v4 = vld [vmem:[%s541_s1 + $0x24] ss:$8 sps:$4 sm:$0xff]   ;;  %v356_v5 = vld [vmem:[%s541_s1 + $0x20] ss:$8 sps:$4 sm:$0xff]  }
   0x3   :  { %233 = vmatpush1.bf16.msra.mxu0 %v350_v1  ;;  %v357_v6 = vld [vmem:[%s541_s1 + $0x34] ss:$8 sps:$4 sm:$0xff]   ;;  %v359_v7 = vld [vmem:[%s541_s1 + $0x30] ss:$8 sps:$4 sm:$0xff]   ;;  %v360_v8 = vld [vmem:[%s541_s1 + $0x44] ss:$8 sps:$4 sm:$0xff]  }
   0x4   :  { %234 = vmatprep.subr.bf16.mxu0 %v351_v2  ;;  %v362_v9 = vld [vmem:[%s541_s1 + $0x40] ss:$8 sps:$4 sm:$0xff]   ;;  %v363_v10 = vld [vmem:[%s541_s1 + $0x54] ss:$8 sps:$4 sm:$0xff]   ;;  %v365_v11 = vld [vmem:[%s541_s1 + $0x50] ss:$8 sps:$4 sm:$0xff]  }
   0x5   :  { %v366_v12 = vld [vmem:[%s541_s1 + $0x64] ss:$8 sps:$4 sm:$0xff]   ;;  %v368_v14 = vld [vmem:[%s541_s1 + $0x60] ss:$8 sps:$4 sm:$0xff]   ;;  %v369_v15 = vld [vmem:[%s541_s1 + $0x74] ss:$8 sps:$4 sm:$0xff]  }
   0x6   :  { %v398_v13 = vld [vmem:[%s542_s0 + $0x4] ss:$8 sps:$4 sm:$0xff]   ;;  %v371_v16 = vld [vmem:[%s541_s1 + $0x70] ss:$8 sps:$4 sm:$0xff]   ;;  %v374_v18 = vld [vmem:[%s541_s1 + $0x80] ss:$8 sps:$4 sm:$0xff]  }
   0x7   :  { %235 = vmatpush1.bf16.msra.mxu0 %v353_v3  ;;  %264 = vmatprep.mubr.bf16.mxu0 %v398_v13  ;;  %v372_v17 = vld [vmem:[%s541_s1 + $0x84] ss:$8 sps:$4 sm:$0xff]   ;;  %v375_v19 = vld [vmem:[%s541_s1 + $0x94] ss:$8 sps:$4 sm:$0xff]   ;;  %v377_v20 = vld [vmem:[%s541_s1 + $0x90] ss:$8 sps:$4 sm:$0xff]  }
   0x8   :  { %236 = vmatprep.subr.bf16.mxu0 %v354_v4  ;;  %v378_v21 = vld [vmem:[%s541_s1 + $0xa4] ss:$8 sps:$4 sm:$0xff]   ;;  %v380_v22 = vld [vmem:[%s541_s1 + $0xa0] ss:$8 sps:$4 sm:$0xff]   ;;  %v381_v23 = vld [vmem:[%s541_s1 + $0xb4] ss:$8 sps:$4 sm:$0xff]  }
   0x9   :  { %v383_v24 = vld [vmem:[%s541_s1 + $0xb0] ss:$8 sps:$4 sm:$0xff]   ;;  %v384_v25 = vld [vmem:[%s541_s1 + $0xc4] ss:$8 sps:$4 sm:$0xff]   ;;  %v386_v26 = vld [vmem:[%s541_s1 + $0xc0] ss:$8 sps:$4 sm:$0xff]  }
   0xa   :  { %v387_v27 = vld [vmem:[%s541_s1 + $0xd4] ss:$8 sps:$4 sm:$0xff]   ;;  %v389_v28 = vld [vmem:[%s541_s1 + $0xd0] ss:$8 sps:$4 sm:$0xff]   ;;  %v390_v29 = vld [vmem:[%s541_s1 + $0xe4] ss:$8 sps:$4 sm:$0xff]  }
   0xb   :  { %237 = vmatpush1.bf16.msra.mxu0 %v356_v5  ;;  %v392_v30 = vld [vmem:[%s541_s1 + $0xe0] ss:$8 sps:$4 sm:$0xff]   ;;  %v393_v31 = vld [vmem:[%s541_s1 + $0xf4] ss:$8 sps:$4 sm:$0xff]   ;;  %v395_v32 = vld [vmem:[%s541_s1 + $0xf0] ss:$8 sps:$4 sm:$0xff]  }
   0xc   :  { %238 = vmatprep.subr.bf16.mxu0 %v357_v6  ;;  %v396_v33 = vld [vmem:[%s542_s0] ss:$8 sps:$4 sm:$0xff]   ;;  %v53_v35 = vshrl.u32 %v52_v34, 7 }
   0xd   :  { %v50_v37 = vld [vmem:[%s543_s2] sm:$0x3] }
   0xe   :  { %v54_v36 = vsub.s32 0, %v53_v35  ;;  %v58_v38 = vsub.s32 1, %v53_v35 }
   0xf   :  { %239 = vmatpush1.bf16.msra.mxu0 %v359_v7 }
  0x10   :  { %240 = vmatprep.subr.bf16.mxu0 %v360_v8  ;;  %v55_v39 = vrot.slane %v50_v37, %v54_v36  ;;  %v59_v40 = vrot.slane %v50_v37, %v58_v38 }
  0x13   :  { %241 = vmatpush1.bf16.msra.mxu0 %v362_v9 }
  0x14   :  { %242 = vmatprep.subr.bf16.mxu0 %v363_v10 }
  0x17   :  { %243 = vmatpush1.bf16.msra.mxu0 %v365_v11 }
  0x18   :  { %244 = vmatprep.subr.bf16.mxu0 %v366_v12 }
  0x1b   :  { %245 = vmatpush1.bf16.msra.mxu0 %v368_v14 }
  0x1c   :  { %246 = vmatprep.subr.bf16.mxu0 %v369_v15 }
  0x1f   :  { %247 = vmatpush1.bf16.msra.mxu0 %v371_v16 }
  0x20   :  { %248 = vmatprep.subr.bf16.mxu0 %v372_v17 }
  0x23   :  { %249 = vmatpush1.bf16.msra.mxu0 %v374_v18 }
  0x24   :  { %250 = vmatprep.subr.bf16.mxu0 %v375_v19 }
  0x27   :  { %251 = vmatpush1.bf16.msra.mxu0 %v377_v20 }
  0x28   :  { %252 = vmatprep.subr.bf16.mxu0 %v378_v21 }
  0x2b   :  { %253 = vmatpush1.bf16.msra.mxu0 %v380_v22 }
  0x2c   :  { %254 = vmatprep.subr.bf16.mxu0 %v381_v23 }
  0x2f   :  { %255 = vmatpush1.bf16.msra.mxu0 %v383_v24 }
  0x30   :  { %256 = vmatprep.subr.bf16.mxu0 %v384_v25 }
  0x33   :  { %257 = vmatpush1.bf16.msra.mxu0 %v386_v26 }
  0x34   :  { %258 = vmatprep.subr.bf16.mxu0 %v387_v27 }
  0x37   :  { %259 = vmatpush1.bf16.msra.mxu0 %v389_v28 }
  0x38   :  { %260 = vmatprep.subr.bf16.mxu0 %v390_v29 }
  0x3b   :  { %261 = vmatpush1.bf16.msra.mxu0 %v392_v30 }
  0x3c   :  { %262 = vmatprep.subr.bf16.mxu0 %v393_v31 }
  0x3f   :  { %263 = vmatpush1.bf16.msra.mxu0 %v395_v32 }
  0x42   :  { %265 = vmatmul.mubr.bf16.vlgmr.msra.gmra.mrb[0].mxu0 %v396_v33 }
 0x115   :  { %v266_v41 = vpop.f32.mrb[0].mxu0 }
 0x116   :  { %v267_v42 = vadd.f32 %v266_v41, %v55_v39  ;;  %v268_v43 = vpop.f32.mrb[1].mxu0 }
 0x117   :  { %v269_v44 = vadd.f32 %v268_v43, %v59_v40  ;;  %v270_v45 = vpop.f32.mrb[2].mxu0 }
 0x118   :  { %v271_v46 = vadd.f32 %v270_v45, %v55_v39  ;;  %v272_v47 = vpop.f32.mrb[3].mxu0  ;;  %v289_v48 = vmul.f32 %v267_v42, %v267_v42 }
 0x119   :  { %v346_v49 = vpack.c.bf16 %v269_v44, %v267_v42  ;;  %v273_v50 = vadd.f32 %v272_v47, %v59_v40  ;;  %v290_v51 = vmul.f32 %v269_v44, %v269_v44 }
 0x11a   :  { %v291_v52 = vmul.f32 %v271_v46, %v271_v46 }
 0x11b   :  { %287 = vst [vmem:[%s544_s3] sm:$0xff] %v346_v49  ;;  %v347_v53 = vpack.c.bf16 %v273_v50, %v271_v46  ;;  %v292_v54 = vmul.f32 %v273_v50, %v273_v50  ;;  %v293_v55 = vadd.f32 %v290_v51, %v289_v48 }
 0x11d   :  { %288 = vst [vmem:[%s544_s3 + $0x8] sm:$0xff] %v347_v53  ;;  %294 = vadd.xlane.f32.xlu0 %v293_v55  ;;  %v296_v56 = vadd.f32 %v292_v54, %v291_v52 }
 0x121   :  { %297 = vadd.xlane.f32.xlu0 %v296_v56 }
 0x1aa   :  { %v295_v57 = vpop.xlane.xlu0 %294 }
 0x1ab   :  { %300 = vst.msk [vmem:[%s545_s4] sm:$0xff] %vm299_vm0, %v295_v57 }
 0x1ae   :  { %v298_v58 = vpop.xlane.xlu0 %297 }
 0x1af   :  { %301 = vst.msk [vmem:[%s545_s4 + $0x8] sm:$0xff] %vm299_vm0, %v298_v58 }

</bundles_post_ra>
